<compile_context>
chip_gen: v6e
topology: v6e:2x2x1
jax: 0.10.0
libtpu: 0.0.40
codegen_flags: <defaults>
</compile_context>

<pallas_src>
import functools
import numpy as np
import jax
import jax.numpy as jnp
from jax.experimental import pallas as pl
from jax.experimental.pallas import tpu as pltpu

NUM_JOINT   = 25
NUM_PERSON  = 2
IN_CHANNELS = 3
GCN_FEAT    = 64          # SRN output channels (per the original GCN_feature)
NUM_CLASS   = 60
VC  = NUM_JOINT * IN_CHANNELS      # 75 real lanes
VCP = 128                          # lane-padded width (multiple of 128)


# ----------------------------------------------------------------------------
# skeleton bookkeeping (mirrors joint_full_body / occlusion_list / joint_list)
# ----------------------------------------------------------------------------
def joint_full_body():
    return np.arange(1, NUM_JOINT + 1)


def joint_list():
    return list(range(NUM_JOINT))


def occlusion_list():
    return [
        [],                                            # 0 (unused)
        [4, 5, 6, 7, 21, 22],                          # 1 left arm
        [8, 9, 10, 11, 23, 24],                        # 2 right arm
        [7, 11, 21, 22, 23, 24],                       # 3 two hands
        [12, 13, 14, 15, 16, 17, 18, 19],              # 4 two legs
        [0, 1, 2, 3, 20],                              # 5 trunk
        [12, 13, 14, 15],                              # 6 left leg
        [16, 17, 18, 19],                              # 7 right leg
        [4, 5, 6, 7, 12, 13, 14, 15, 21, 22],          # 8 left body
        [8, 9, 10, 11, 16, 17, 18, 19, 23, 24],        # 9 right body
        [], [], [], [],                                # 10-13 random-joint modes
    ]


def build_adjacency():
    edges_1idx = [(1, 2), (2, 21), (3, 21), (4, 3), (5, 21), (6, 5), (7, 6),
                  (8, 7), (9, 21), (10, 9), (11, 10), (12, 11), (13, 1),
                  (14, 13), (15, 14), (16, 15), (17, 1), (18, 17), (19, 18),
                  (20, 19), (22, 23), (23, 8), (24, 25), (25, 12)]
    A = np.eye(NUM_JOINT, dtype=np.float32)
    for i, j in edges_1idx:
        A[i - 1, j - 1] = 1.0
        A[j - 1, i - 1] = 1.0
    A = A / A.sum(axis=1, keepdims=True)
    return jnp.asarray(A)


def _plan_rows(S, cap=2048):
    # Split the S = M*T rows into <= cap-row chunks (cap raised per review to
    # amortize the ~0.35us per-grid-step overhead), rounded to 8 sublanes, and
    # pad S so the tile divides it exactly.
    n_chunks = max(1, -(-S // cap))
    tb = -(-S // n_chunks)
    tb = ((tb + 7) // 8) * 8
    return tb, tb * n_chunks, n_chunks


# ----------------------------------------------------------------------------
# fused Pallas kernel
# ----------------------------------------------------------------------------
def _fused_kernel(x_ref, m_ref, e_ref, w_ref, b_ref, wc_ref, bc_ref,
                  rec_ref, cls_ref, pool_acc, *, inv_s):
    # x_ref:   (tb, 128) bf16  original skeleton rows (lanes 75..127 are zero)
    # m_ref:   (tb, 25)  bf16  0/1 per-joint visibility mask
    # e_ref:   (25, 128) bf16  joint -> lane expansion matrix (E[v, v*3+c] = 1)
    # w_ref:   (128,128) bf16  collapsed SRN+FC operator (A-agg x channel mix)
    # b_ref:   (1, 128)  f32   FC bias tiled per joint (zero in pad lanes)
    # wc_ref:  (128, 60) f32   classifier weight (zero pad rows)
    # bc_ref:  (1, 60)   f32   classifier bias
    # rec_ref: (tb, 128) bf16  raw recovery output
    # cls_ref: (1, 60)   f32   per-sample logits (written on last row chunk)
    # pool_acc:(1, 128)  f32   per-sample running sum of the repaired skeleton
    s = pl.program_id(1)

    x = x_ref[...].astype(jnp.float32)
    # per-joint mask -> per-lane mask, exact 0/1, done on the MXU (free slot)
    m_full = jnp.dot(m_ref[...], e_ref[...], preferred_element_type=jnp.float32)
    x_occ = x * m_full                                  # occlusion applied in VMEM

    rec = jnp.dot(x_occ.astype(jnp.bfloat16), w_ref[...],
                  preferred_element_type=jnp.float32) + b_ref[...]
    rec_ref[...] = rec.astype(rec_ref.dtype)

    # repair = rec * (1 - mask) + ori * mask  ==  where(mask, ori, rec)
    rep = jnp.where(m_full != 0.0, x, rec)

    @pl.when(s == 0)
    def _():
        pool_acc[...] = jnp.zeros_like(pool_acc)
        cls_ref[...] = jnp.zeros_like(cls_ref)
    pool_acc[...] += jnp.sum(rep, axis=0, keepdims=True)

    # classifier fused into the last row-chunk: mean pool + 128 -> 60 linear
    @pl.when(s == pl.num_programs(1) - 1)
    def _():
        pooled = pool_acc[...] * inv_s
        cls_ref[...] = jnp.dot(pooled, wc_ref[...],
                               preferred_element_type=jnp.float32) + bc_ref[...]


# ----------------------------------------------------------------------------
# parameters
# ----------------------------------------------------------------------------
def init_params(key):
    k1, k2, k3 = jax.random.split(key, 3)
    return {
        "A": build_adjacency(),
        "w_srn": 0.1 * jax.random.normal(k1, (IN_CHANNELS, GCN_FEAT), jnp.float32),
        "w_fc": 0.1 * jax.random.normal(k2, (GCN_FEAT, IN_CHANNELS), jnp.float32),
        "b_fc": jnp.zeros((1, IN_CHANNELS), jnp.float32),
        "w_cls": 0.1 * jax.random.normal(k3, (VC, NUM_CLASS), jnp.float32),
        "b_cls": jnp.zeros((1, NUM_CLASS), jnp.float32),
    }


# ----------------------------------------------------------------------------
# fused jitted core
# ----------------------------------------------------------------------------
@jax.jit
def _forward_core(params, x, mask_tv):
    N, C, T, V, M = x.shape
    S = M * T
    pad_l = VCP - VC

    # Collapse the linear 3 -> 64 -> 3 SRN + FC chain into one (75,75) operator
    # M_eff[v*C+c, u*C+d] = A[u, v] * (w_srn @ w_fc)[c, d], zero-padded to 128.
    # TODO(synk): valid only while SRN/FC stand-ins stay linear; with the real
    #             nonlinear modules keep the 64-wide feature in VMEM scratch.
    w_eff = params["w_srn"] @ params["w_fc"]                             # (3, 3)
    m_eff = jnp.einsum("uv,cd->vcud", params["A"], w_eff).reshape(VC, VC)
    m_eff = jnp.pad(m_eff, ((0, pad_l), (0, pad_l))).astype(jnp.bfloat16)
    b_pad = jnp.pad(jnp.tile(params["b_fc"], (1, V)), ((0, 0), (0, pad_l)))
    w_cls = jnp.pad(params["w_cls"], ((0, pad_l), (0, 0)))               # (128,60)
    b_cls = params["b_cls"]                                              # (1, 60)
    # joint-mask -> lane-mask expansion matrix, E[v, v*C + c] = 1
    expand = jnp.pad(jnp.repeat(jnp.eye(V, dtype=jnp.float32), C, axis=1),
                     ((0, 0), (0, pad_l))).astype(jnp.bfloat16)          # (25,128)

    tb, s_pad, n_chunks = _plan_rows(S)

    # single channels-last layout change; lane-pad to 128 and cast to bf16
    x_cl = jnp.transpose(x, (0, 4, 2, 3, 1)).reshape(N, S, VC)
    x_flat = jnp.pad(x_cl, ((0, 0), (0, s_pad - S), (0, pad_l))
                     ).astype(jnp.bfloat16)
    # compact (n,t,v) mask tiled over persons; padded rows = visible (1) so
    # they contribute zero to the pooled sum
    m_s = jnp.tile(mask_tv, (1, M, 1))                                   # (N,S,V)
    m_flat = jnp.pad(m_s, ((0, 0), (0, s_pad - S), (0, 0)),
                     constant_values=1.0).astype(jnp.bfloat16)

    # TODO(synk): for v7x with tiny per-device N, merge batch into the row axis
    #             (per-chunk partial pool + combine) so both TCs stay busy.
    rec_flat, cls_out = pl.pallas_call(
        functools.partial(_fused_kernel, inv_s=1.0 / S),
        out_shape=(jax.ShapeDtypeStruct((N, s_pad, VCP), jnp.bfloat16),
                   jax.ShapeDtypeStruct((N, 1, NUM_CLASS), jnp.float32)),
        grid=(N, n_chunks),
        in_specs=[
            pl.BlockSpec((None, tb, VCP), lambda n, s: (n, s, 0)),
            pl.BlockSpec((None, tb, V), lambda n, s: (n, s, 0)),
            pl.BlockSpec((V, VCP), lambda n, s: (0, 0)),
            pl.BlockSpec((VCP, VCP), lambda n, s: (0, 0)),
            pl.BlockSpec((1, VCP), lambda n, s: (0, 0)),
            pl.BlockSpec((VCP, NUM_CLASS), lambda n, s: (0, 0)),
            pl.BlockSpec((1, NUM_CLASS), lambda n, s: (0, 0)),
        ],
        out_specs=(
            pl.BlockSpec((None, tb, VCP), lambda n, s: (n, s, 0)),
            pl.BlockSpec((None, 1, NUM_CLASS), lambda n, s: (n, 0, 0)),
        ),
        scratch_shapes=[pltpu.VMEM((1, VCP), jnp.float32)],
        compiler_params=pltpu.CompilerParams(
            dimension_semantics=("parallel", "arbitrary")),
    )(x_flat, m_flat, expand, m_eff, b_pad, w_cls, b_cls)

    recover_parts = jnp.transpose(
        rec_flat[:, :S, :VC].astype(jnp.float32).reshape(N, M, T, V, C),
        (0, 4, 2, 3, 1))                                                 # NCTVM
    predict_action = cls_out.reshape(N, NUM_CLASS)
    # full-layout mask only materialized because the module returns it
    x_mask = jnp.broadcast_to(mask_tv[:, None, :, :, None],
                              (N, C, T, V, M)).astype(jnp.float32)
    return recover_parts, predict_action, x_mask


# ----------------------------------------------------------------------------
# forward pass (Training_Student_Model.forward)
# ----------------------------------------------------------------------------
def training_student_forward(params, x, np_rng):
    # x: (N, C, T, V, M) float32 — PyTorch NCTVM skeleton layout
    N, C, T, V, M = x.shape
    occ = occlusion_list()
    joints = joint_list()

    # Host-side random occlusion (mirrors the original numpy logic) but built
    # compactly as (N, T, V): the original mask is constant over channels and
    # persons. Inner per-frame loop vectorized with an argsort permutation.
    # TODO(synk): original hard-codes the mask shape to (N,3,300,25,2); we size
    #             it to x so small test shapes stay consistent.
    mask_tv = np.ones((N, T, V), dtype=np.float32)
    num_parts = 13
    part_indices = np_rng.integers(0, num_parts, size=N)
    for i_b in range(N):
        part_index = int(part_indices[i_b])
        if part_index <= 8:
            mask_tv[i_b][:, occ[part_index + 1]] = 0.0
        else:
            miss_rate = float(np_rng.choice([0.2, 0.3, 0.4, 0.5, 0.6]))
            k = int(len(joints) * miss_rate)
            if k > 0:
                order = np.argsort(np_rng.random((T, V)), axis=1)[:, :k]
                rows = np.repeat(np.arange(T), k)
                mask_tv[i_b, rows, order.ravel()] = 0.0

    recover_parts, predict_action, x_mask = _forward_core(
        params, x, jnp.asarray(mask_tv))
    return recover_parts, predict_action, x_mask


# ----------------------------------------------------------------------------
# pure-JAX reference (non-collapsed 3 -> 64 -> 3 path) for a correctness check
# ----------------------------------------------------------------------------
def _reference_forward(params, x, x_mask):
    N, C, T, V, M = x.shape
    x_occ = x * x_mask
    agg = jnp.einsum("uv,nctvm->nctum", params["A"], x_occ)
    rec = jnp.einsum("nctum,cf,fd->ndtum", agg, params["w_srn"], params["w_fc"])
    rec = rec + params["b_fc"][0].reshape(1, C, 1, 1, 1)
    rep = rec * (1.0 - x_mask) + x * x_mask
    x_cls = jnp.transpose(rep, (0, 4, 2, 3, 1)).reshape(N, M * T, V * C)
    pred = jnp.mean(x_cls, axis=1) @ params["w_cls"] + params["b_cls"]
    return rec, pred


# ----------------------------------------------------------------------------
if __name__ == "__main__":
    N, C, T, V, M = 2, 3, 16, 25, 2
    x = jax.random.normal(jax.random.PRNGKey(0), (N, C, T, V, M), dtype=jnp.float32)
    params = init_params(jax.random.PRNGKey(42))
    np_rng = np.random.default_rng(0)

    recover_parts, predict_action, x_mask = training_student_forward(params, x, np_rng)
    jax.block_until_ready((recover_parts, predict_action, x_mask))

    assert recover_parts.shape == (N, C, T, V, M)
    assert predict_action.shape == (N, NUM_CLASS)
    assert x_mask.shape == (N, C, T, V, M)

    rec_ref, pred_ref = _reference_forward(params, x, x_mask)
    assert np.allclose(np.asarray(recover_parts), np.asarray(rec_ref),
                       rtol=1e-2, atol=1e-2), "recover_parts mismatch"
    assert np.allclose(np.asarray(predict_action), np.asarray(pred_ref),
                       rtol=1e-2, atol=1e-2), "predict_action mismatch"

    print("KERNEL_OK")
</pallas_src>

<mosaic_0001>
module attributes {stable_mosaic.version = 11 : i64} {
  func.func @_fused_kernel(%arg0: i32, %arg1: i32, %arg2: memref<1x32x128xbf16, #tpu.memory_space<vmem>>, %arg3: memref<1x32x25xbf16, #tpu.memory_space<vmem>>, %arg4: memref<25x128xbf16, #tpu.memory_space<vmem>>, %arg5: memref<128x128xbf16, #tpu.memory_space<vmem>>, %arg6: memref<1x128xf32, #tpu.memory_space<vmem>>, %arg7: memref<128x60xf32, #tpu.memory_space<vmem>>, %arg8: memref<1x60xf32, #tpu.memory_space<vmem>>, %arg9: memref<1x32x128xbf16, #tpu.memory_space<vmem>>, %arg10: memref<1x1x60xf32, #tpu.memory_space<vmem>>, %arg11: memref<1x128xf32, #tpu.memory_space<vmem>>) attributes {dimension_semantics = [#tpu.dimension_semantics<parallel>, #tpu.dimension_semantics<arbitrary>], iteration_bounds = array<i64: 2, 1>, scalar_prefetch = 0 : i64, scratch_operands = 1 : i64, tpu.core_type = #tpu.core_type<tc>, window_params = [{transform_indices = @transform_0, window_bounds = array<i64: 1, 32, 128>}, {transform_indices = @transform_1, window_bounds = array<i64: 1, 32, 25>}, {pipeline_mode = #tpu.pipeline_mode<synchronous>, transform_indices = @transform_2, window_bounds = array<i64: 25, 128>}, {pipeline_mode = #tpu.pipeline_mode<synchronous>, transform_indices = @transform_3, window_bounds = array<i64: 128, 128>}, {pipeline_mode = #tpu.pipeline_mode<synchronous>, transform_indices = @transform_4, window_bounds = array<i64: 1, 128>}, {pipeline_mode = #tpu.pipeline_mode<synchronous>, transform_indices = @transform_5, window_bounds = array<i64: 128, 60>}, {pipeline_mode = #tpu.pipeline_mode<synchronous>, transform_indices = @transform_6, window_bounds = array<i64: 1, 60>}, {transform_indices = @transform_7, window_bounds = array<i64: 1, 32, 128>}, {transform_indices = @transform_8, window_bounds = array<i64: 1, 1, 60>}]} {
    %c0 = arith.constant 0 : index
    %c0_0 = arith.constant 0 : index
    %c0_1 = arith.constant 0 : index
    %0 = vector.load %arg2[%c0, %c0_0, %c0_1] : memref<1x32x128xbf16, #tpu.memory_space<vmem>>, vector<1x32x128xbf16>
    %1 = vector.shape_cast %0 : vector<1x32x128xbf16> to vector<32x128xbf16>
    %2 = arith.extf %1 : vector<32x128xbf16> to vector<32x128xf32>
    %c0_2 = arith.constant 0 : index
    %c0_3 = arith.constant 0 : index
    %c0_4 = arith.constant 0 : index
    %3 = vector.load %arg3[%c0_2, %c0_3, %c0_4] : memref<1x32x25xbf16, #tpu.memory_space<vmem>>, vector<1x32x25xbf16>
    %4 = vector.shape_cast %3 : vector<1x32x25xbf16> to vector<32x25xbf16>
    %c0_5 = arith.constant 0 : index
    %c0_6 = arith.constant 0 : index
    %5 = vector.load %arg4[%c0_5, %c0_6] : memref<25x128xbf16, #tpu.memory_space<vmem>>, vector<25x128xbf16>
    %cst = arith.constant dense<0.000000e+00> : vector<32x128xf32>
    %6 = tpu.matmul %4, %5, %cst {dimension_numbers = #tpu.dot_dimension_numbers<[1], [0], [0], [1], [0, 0, 1, 1], [], []>} : vector<32x25xbf16>, vector<25x128xbf16>, vector<32x128xf32> -> vector<32x128xf32>
    %7 = arith.mulf %2, %6 : vector<32x128xf32>
    %8 = arith.truncf %7 : vector<32x128xf32> to vector<32x128xbf16>
    %c0_7 = arith.constant 0 : index
    %c0_8 = arith.constant 0 : index
    %9 = vector.load %arg5[%c0_7, %c0_8] : memref<128x128xbf16, #tpu.memory_space<vmem>>, vector<128x128xbf16>
    %cst_9 = arith.constant dense<0.000000e+00> : vector<32x128xf32>
    %10 = tpu.matmul %8, %9, %cst_9 {dimension_numbers = #tpu.dot_dimension_numbers<[1], [0], [0], [1], [0, 0, 1, 1], [], []>} : vector<32x128xbf16>, vector<128x128xbf16>, vector<32x128xf32> -> vector<32x128xf32>
    %c0_10 = arith.constant 0 : index
    %c0_11 = arith.constant 0 : index
    %11 = vector.load %arg6[%c0_10, %c0_11] : memref<1x128xf32, #tpu.memory_space<vmem>>, vector<1x128xf32>
    %12 = vector.broadcast %11 : vector<1x128xf32> to vector<32x128xf32>
    %13 = arith.addf %10, %12 : vector<32x128xf32>
    %14 = arith.truncf %13 : vector<32x128xf32> to vector<32x128xbf16>
    %c0_12 = arith.constant 0 : index
    %c0_13 = arith.constant 0 : index
    %c0_14 = arith.constant 0 : index
    %15 = vector.load %arg9[%c0_12, %c0_13, %c0_14] : memref<1x32x128xbf16, #tpu.memory_space<vmem>>, vector<1x32x128xbf16>
    %16 = vector.shape_cast %15 : vector<1x32x128xbf16> to vector<32x128xbf16>
    %17 = vector.shape_cast %14 : vector<32x128xbf16> to vector<1x32x128xbf16>
    tpu.vector_store %arg9[%c0_12, %c0_13, %c0_14], %17 {strides = array<i32>} : memref<1x32x128xbf16, #tpu.memory_space<vmem>>, vector<1x32x128xbf16>,
    %cst_15 = arith.constant 0.000000e+00 : f32
    %18 = vector.broadcast %cst_15 : f32 to vector<32x128xf32>
    %19 = arith.cmpf one, %6, %18 : vector<32x128xf32>
    %20 = arith.select %19, %2, %13 : vector<32x128xi1>, vector<32x128xf32>
    %c0_i32 = arith.constant 0 : i32
    %21 = arith.cmpi eq, %arg1, %c0_i32 : i32
    %22 = arith.extui %21 : i1 to i32
    %c0_i32_16 = arith.constant 0 : i32
    %23 = arith.cmpi ne, %22, %c0_i32_16 : i32
    scf.if %23 {
      %cst_24 = arith.constant 0.000000e+00 : f32
      %32 = vector.broadcast %cst_24 : f32 to vector<1x128xf32>
      %c0_25 = arith.constant 0 : index
      %c0_26 = arith.constant 0 : index
      %33 = vector.load %arg11[%c0_25, %c0_26] : memref<1x128xf32, #tpu.memory_space<vmem>>, vector<1x128xf32>
      tpu.vector_store %arg11[%c0_25, %c0_26], %32 {strides = array<i32>} : memref<1x128xf32, #tpu.memory_space<vmem>>, vector<1x128xf32>,
      %cst_27 = arith.constant 0.000000e+00 : f32
      %34 = vector.broadcast %cst_27 : f32 to vector<1x60xf32>
      %c0_28 = arith.constant 0 : index
      %c0_29 = arith.constant 0 : index
      %c0_30 = arith.constant 0 : index
      %35 = vector.load %arg10[%c0_28, %c0_29, %c0_30] : memref<1x1x60xf32, #tpu.memory_space<vmem>>, vector<1x1x60xf32>
      %36 = vector.shape_cast %35 : vector<1x1x60xf32> to vector<1x60xf32>
      %37 = vector.shape_cast %34 : vector<1x60xf32> to vector<1x1x60xf32>
      tpu.vector_store %arg10[%c0_28, %c0_29, %c0_30], %37 {strides = array<i32>} : memref<1x1x60xf32, #tpu.memory_space<vmem>>, vector<1x1x60xf32>,
    } else {
    }
    %c0_17 = arith.constant 0 : index
    %c0_18 = arith.constant 0 : index
    %24 = vector.load %arg11[%c0_17, %c0_18] : memref<1x128xf32, #tpu.memory_space<vmem>>, vector<1x128xf32>
    %cst_19 = arith.constant dense<0.000000e+00> : vector<128xf32>
    %25 = vector.multi_reduction <add>, %20, %cst_19 [0] : vector<32x128xf32> to vector<128xf32>
    %26 = vector.shape_cast %25 : vector<128xf32> to vector<1x128xf32>
    %27 = arith.addf %24, %26 : vector<1x128xf32>
    %c0_20 = arith.constant 0 : index
    %c0_21 = arith.constant 0 : index
    %28 = vector.load %arg11[%c0_20, %c0_21] : memref<1x128xf32, #tpu.memory_space<vmem>>, vector<1x128xf32>
    tpu.vector_store %arg11[%c0_20, %c0_21], %27 {strides = array<i32>} : memref<1x128xf32, #tpu.memory_space<vmem>>, vector<1x128xf32>,
    %c0_i32_22 = arith.constant 0 : i32
    %29 = arith.cmpi eq, %arg1, %c0_i32_22 : i32
    %30 = arith.extui %29 : i1 to i32
    %c0_i32_23 = arith.constant 0 : i32
    %31 = arith.cmpi ne, %30, %c0_i32_23 : i32
    scf.if %31 {
      %c0_24 = arith.constant 0 : index
      %c0_25 = arith.constant 0 : index
      %32 = vector.load %arg11[%c0_24, %c0_25] : memref<1x128xf32, #tpu.memory_space<vmem>>, vector<1x128xf32>
      %cst_26 = arith.constant 3.125000e-02 : f32
      %33 = vector.broadcast %cst_26 : f32 to vector<1x128xf32>
      %34 = arith.mulf %32, %33 : vector<1x128xf32>
      %c0_27 = arith.constant 0 : index
      %c0_28 = arith.constant 0 : index
      %35 = vector.load %arg7[%c0_27, %c0_28] : memref<128x60xf32, #tpu.memory_space<vmem>>, vector<128x60xf32>
      %cst_29 = arith.constant dense<0.000000e+00> : vector<1x60xf32>
      %36 = tpu.matmul %34, %35, %cst_29 {dimension_numbers = #tpu.dot_dimension_numbers<[1], [0], [0], [1], [0, 0, 1, 1], [], []>} : vector<1x128xf32>, vector<128x60xf32>, vector<1x60xf32> -> vector<1x60xf32>
      %c0_30 = arith.constant 0 : index
      %c0_31 = arith.constant 0 : index
      %37 = vector.load %arg8[%c0_30, %c0_31] : memref<1x60xf32, #tpu.memory_space<vmem>>, vector<1x60xf32>
      %38 = arith.addf %36, %37 : vector<1x60xf32>
      %c0_32 = arith.constant 0 : index
      %c0_33 = arith.constant 0 : index
      %c0_34 = arith.constant 0 : index
      %39 = vector.load %arg10[%c0_32, %c0_33, %c0_34] : memref<1x1x60xf32, #tpu.memory_space<vmem>>, vector<1x1x60xf32>
      %40 = vector.shape_cast %39 : vector<1x1x60xf32> to vector<1x60xf32>
      %41 = vector.shape_cast %38 : vector<1x60xf32> to vector<1x1x60xf32>
      tpu.vector_store %arg10[%c0_32, %c0_33, %c0_34], %41 {strides = array<i32>} : memref<1x1x60xf32, #tpu.memory_space<vmem>>, vector<1x1x60xf32>,
    } else {
    }
    return
  }
  func.func @transform_0(%arg0: i32, %arg1: i32) -> (i32, i32, i32) {
    %c0_i32 = arith.constant 0 : i32
    %c0_i32_0 = arith.constant 0 : i32
    return %arg0, %arg1, %c0_i32 : i32, i32, i32
  }
  func.func @transform_1(%arg0: i32, %arg1: i32) -> (i32, i32, i32) {
    %c0_i32 = arith.constant 0 : i32
    %c0_i32_0 = arith.constant 0 : i32
    return %arg0, %arg1, %c0_i32 : i32, i32, i32
  }
  func.func @transform_2(%arg0: i32, %arg1: i32) -> (i32, i32) {
    %c0_i32 = arith.constant 0 : i32
    %c0_i32_0 = arith.constant 0 : i32
    %c0_i32_1 = arith.constant 0 : i32
    return %c0_i32, %c0_i32_0 : i32, i32
  }
  func.func @transform_3(%arg0: i32, %arg1: i32) -> (i32, i32) {
    %c0_i32 = arith.constant 0 : i32
    %c0_i32_0 = arith.constant 0 : i32
    %c0_i32_1 = arith.constant 0 : i32
    return %c0_i32, %c0_i32_0 : i32, i32
  }
  func.func @transform_4(%arg0: i32, %arg1: i32) -> (i32, i32) {
    %c0_i32 = arith.constant 0 : i32
    %c0_i32_0 = arith.constant 0 : i32
    %c0_i32_1 = arith.constant 0 : i32
    return %c0_i32, %c0_i32_0 : i32, i32
  }
  func.func @transform_5(%arg0: i32, %arg1: i32) -> (i32, i32) {
    %c0_i32 = arith.constant 0 : i32
    %c0_i32_0 = arith.constant 0 : i32
    %c0_i32_1 = arith.constant 0 : i32
    return %c0_i32, %c0_i32_0 : i32, i32
  }
  func.func @transform_6(%arg0: i32, %arg1: i32) -> (i32, i32) {
    %c0_i32 = arith.constant 0 : i32
    %c0_i32_0 = arith.constant 0 : i32
    %c0_i32_1 = arith.constant 0 : i32
    return %c0_i32, %c0_i32_0 : i32, i32
  }
  func.func @transform_7(%arg0: i32, %arg1: i32) -> (i32, i32, i32) {
    %c0_i32 = arith.constant 0 : i32
    %c0_i32_0 = arith.constant 0 : i32
    return %arg0, %arg1, %c0_i32 : i32, i32, i32
  }
  func.func @transform_8(%arg0: i32, %arg1: i32) -> (i32, i32, i32) {
    %c0_i32 = arith.constant 0 : i32
    %c0_i32_0 = arith.constant 0 : i32
    %c0_i32_1 = arith.constant 0 : i32
    return %arg0, %c0_i32, %c0_i32_0 : i32, i32, i32
  }
}

</mosaic_0001>

<bundles_post_ra>
// kernel: _forward_core.1
= control target key start
LH: loop header
LB: loop body
LE: loop exit
PB: predicated region body
PF: predicated region fallthrough
CT: control target
= control target key end

     0   :  { %14 = vsyncpa [#allocation4], 0  ;;  %s1519_s0 = inlined_call_operand.vmem [shape: bf16[2,32,128], index: 0, kind: input, shape index: {}]   ;;  %s1520_s1 = inlined_call_operand.vmem [shape: bf16[2,32,25], index: 1, kind: input, shape index: {}]   ;;  %s1521_s2 = inlined_call_operand.vmem [shape: bf16[25,128], index: 2, kind: input, shape index: {}]   ;;  %s1522_s3 = inlined_call_operand.vmem [shape: bf16[128,128], index: 3, kind: input, shape index: {}]   ;;  %s1523_s4 = inlined_call_operand.vmem [shape: f32[1,128], index: 4, kind: input, shape index: {}]   ;;  %s1524_s5 = inlined_call_operand.vmem [shape: f32[128,60], index: 5, kind: input, shape index: {}]   ;;  %s1525_s6 = inlined_call_operand.vmem [shape: f32[1,60], index: 6, kind: input, shape index: {}]   ;;  %s1526_s7 = inlined_call_operand.vmem [shape: bf16[2,32,128], index: 7, kind: output, shape index: {0}]   ;;  %s1527_s8 = inlined_call_operand.hbm [shape: f32[2,1,60], index: 8, kind: output, shape index: {1}]  }
   0x1   :  { %16 = vsyncpa [#allocation4 + $0x1], 0  ;;  %s1260_s27 = smov 0   ;;  %s1262_s28 = smov 0  }
   0x2   :  { %s1264_s29 = smov 0   ;;  %s1266_s30 = smov 0  }
   0x3   :  { %s1268_s9 = smov 0   ;;  %s1270_s10 = smov 0  }
   0x4 LB: > { %s909_s11 = sadd.s32 4294967295, %s1209_s10   ;;  %s910_s12 = sadd.s32 4294967294, %s1209_s10   ;;  %s1209_s10 = sphi %s1270_s10, %s22_s10   ;;  %s1205_s9 = sphi %s1268_s9, %s1534_s9   ;;  %s1201_s30 = sphi %s1266_s30, %s1533_s30   ;;  %s1197_s29 = sphi %s1264_s29, %s1532_s29   ;;  %s1193_s28 = sphi %s1262_s28, %s1531_s28   ;;  %s1189_s27 = sphi %s1260_s27, %s1530_s27  }
   0x5   : > { %s34_s13 = sadd.s32 1, %s1205_s9  ;;  %s230_s14 = sadd.s32 1, %s1197_s29 }
   0x6   : > { %p36_p0 = scmp.ge.s32.totalorder %s34_s13, 2  ;;  %p240_p1 = scmp.ne.s32.totalorder %s1197_s29, %s1193_s28 }
   0x7   : > { %p241_p2 = scmp.eq.s32.totalorder %s909_s11, 1  ;;  %p246_p3 = scmp.ne.s32.totalorder %s1193_s28, %s1189_s27 }
   0x8   : > { %s1536_s13 = smov (%p36_p0, %s34_s13), 0  ;;  %p247_p5 = scmp.eq.s32.totalorder %s910_s12, 1 }
   0x9   : > { %p1300_p4 = por %p241_p2, %p240_p1  ;;  %s227_s16 = ssub.s32 %s1205_s9, %s1536_s13 }
   0xa   : > { %p913_p6 = scmp.ge.s32.totalorder %s1209_s10, 1  ;;  %p228_p7 = scmp.eq.s32.totalorder %s227_s16, 0 }
   0xb   : > { %p1307_p8 = por %p247_p5, %p246_p3  ;;  %p306_p9 = scmp.lt.s32.totalorder %s1209_s10, 3 }
   0xc   : > { %s1313_s18 = scalar_select %p228_p7, %s1197_s29, %s230_s14  }
   0xd   : > { %p307_p10 = pnand %p913_p6, %p306_p9 }
   0xe   : > { %p362_p11 = scmp.lt.s32.totalorder (!%p307_p10), %s1201_s30, 1  ;;  %s939_s20 = sshll.u32 (!%p307_p10), %s1201_s30, 4 }
   0xf   : > { %310 = sbr.rel (%p307_p10) target bundleno = 677 (0x2a5), region = 48  ;;  %s1479_s24 = scalar_lea.hbm (!%p307_p10), %s1527_s8, %s939_s20 }
  0x14   : > { %v1121_v0 = vld [vmem:[%s1521_s2 + $0x8] sm:$0x1f]   ;;  %vm436_vm0 = vcmask 1043456   ;;  %vm437_vm1 = vcmask 1044480   ;;  %v1211_v1 = vmov 65535   ;;  %v1125_v3 = vld [vmem:[%s1522_s3 + $0x38] sm:$0xff]  }
  0x15   : > { %v438_v2 = vsel %vm436_vm0, 4294967295, %v1211_v1  ;;  %v1126_v5 = vld [vmem:[%s1522_s3 + $0x30] sm:$0xff]   ;;  %v1122_v7 = vld [vmem:[%s1521_s2] sm:$0xff]   ;;  %s363_s11 = scalar_select %p362_p11, %s1201_s30, 1  ;;  %1008 = vmatprep.subr.bf16.mxu1 %v1125_v3  ;;  %v1127_v8 = vld [vmem:[%s1522_s3 + $0x28] sm:$0xff]   ;;  %vm429_vm2 = vcmask 203776  }
  0x16   : > { %v439_v4 = vsel %vm437_vm1, %v438_v2, 0  ;;  %1009 = vmatpush3.bf16.msra.mxu1 %v1125_v3  ;;  %v1128_v10 = vld [vmem:[%s1522_s3 + $0x20] sm:$0xff]   ;;  %v1129_v12 = vld [vmem:[%s1522_s3 + $0x18] sm:$0xff]   ;;  %v1130_v13 = vld [vmem:[%s1522_s3 + $0x10] sm:$0xff]   ;;  %v1212_v32 = vmov 0.0   ;;  %vm1213_vm3 = vmmov 0  }
  0x17   : > { %v441_v6 = vand.u32 %v1121_v0, %v439_v4  ;;  %s1329_s12 = sshll.u32 %s363_s11, 4  ;;  %1010 = vmatprep.subr.bf16.mxu1 %v1126_v5  ;;  %v1131_v14 = vld [vmem:[%s1522_s3 + $0x8] sm:$0xff]   ;;  %v1132_v15 = vld [vmem:[%s1522_s3] sm:$0xff]   ;;  %650 = vst [vmem:[#allocation2] sm:$0x1] %v1212_v32  ;;  %v685_v33 = vld [vmem:[%s1524_s5 + $0x78] sm:$0xff] }
  0x18   : > { %s379_s21 = scalar_lea.vmem %s1520_s1, %s1329_s12  ;;  %s369_s23 = scalar_lea.vmem %s1519_s0, %s1329_s12  ;;  %v684_v34 = vld [vmem:[%s1524_s5 + $0x70] sm:$0xff]  ;;  %v683_v35 = vld [vmem:[%s1524_s5 + $0x68] sm:$0xff]  ;;  %v682_v36 = vld [vmem:[%s1524_s5 + $0x60] sm:$0xff]  ;;  %vm651_vm8 = vcmask 483328  }
  0x19   : > { %1000 = vmatprep.subr.bf16.mxu0 %v441_v6  ;;  %v1123_v9 = vld [vmem:[%s379_s21] sm:$0xff]   ;;  %v1124_v11 = vld [vmem:[%s379_s21 + $0x8] sm:$0xff]   ;;  %v681_v37 = vld [vmem:[%s1524_s5 + $0x58] sm:$0xff]  ;;  %s389_s11 = scalar_lea.vmem %s1526_s7, %s1329_s12  ;;  %s359_s12 = sand.u32 1, %s1193_s28  }
  0x1a   : > { %1001 = vmatpush3.bf16.msra.mxu0 %v441_v6  ;;  %1011 = vmatpush3.bf16.msra.mxu1 %v1126_v5  ;;  %v1359_v17 = vld [vmem:[%s369_s23] sm:$0xff]   ;;  %v1361_v18 = vld [vmem:[%s369_s23 + $0x8] sm:$0xff]   ;;  %v680_v38 = vld [vmem:[%s1524_s5 + $0x50] sm:$0xff]  ;;  %s360_s14 = scalar_lea.vmem [#allocation3], %s359_s12  ;;  %s769_s25 = scalar_lea.sflag [#allocation4], %s359_s12 }
  0x1b   : > { %1002 = vmatprep.subr.bf16.mxu0 %v1122_v7  ;;  %1004 = vmatprep.mubr.msk.bf16.mxu0 %vm429_vm2, %v1123_v9  ;;  %v956_v20 = vunpack.c.h.bf16 %v1361_v18  ;;  %v951_v21 = vunpack.c.l.bf16 %v1359_v17  ;;  %v952_v22 = vunpack.c.h.bf16 %v1359_v17  ;;  %v955_v23 = vunpack.c.l.bf16 %v1361_v18  ;;  %v679_v39 = vld [vmem:[%s1524_s5 + $0x48] sm:$0xff]  ;;  %v678_v40 = vld [vmem:[%s1524_s5 + $0x40] sm:$0xff]  ;;  %v677_v41 = vld [vmem:[%s1524_s5 + $0x38] sm:$0xff]  ;;  %652 = vst.msk [vmem:[%s360_s14] sm:$0x1] %vm651_vm8, %v1212_v32  ;;  %s785_s21 = sshll.u32 %s360_s14, 4  ;;  %s786_s21 = int_to_ptr.vmem [resolvable:$true] %s785_s21 }
  0x1c   : > { %1012 = vmatprep.subr.bf16.mxu1 %v1127_v8  ;;  %v676_v42 = vld [vmem:[%s1524_s5 + $0x30] sm:$0xff]  ;;  %v675_v43 = vld [vmem:[%s1524_s5 + $0x28] sm:$0xff]  ;;  %v674_v44 = vld [vmem:[%s1524_s5 + $0x20] sm:$0xff]  ;;  %s1133_s26 = scalar_lea.vmem %s786_s21, 16 }
  0x1d   : > { %v673_v45 = vld [vmem:[%s1524_s5 + $0x18] sm:$0xff]  ;;  %v672_v46 = vld [vmem:[%s1524_s5 + $0x10] sm:$0xff]  ;;  %v671_v47 = vld [vmem:[%s1524_s5 + $0x8] sm:$0xff]  ;;  %p1134_p12 = scmp.ne.s32.totalorder %s786_s21, %s1133_s26 }
  0x1e   : > { %1003 = vmatpush3.bf16.msra.mxu0 %v1122_v7  ;;  %1013 = vmatpush3.bf16.msra.mxu1 %v1127_v8  ;;  %v670_v48 = vld [vmem:[%s1524_s5] sm:$0xff] }
  0x1f   : > { %1014 = vmatprep.subr.bf16.mxu1 %v1128_v10  ;;  %1028 = vmatprep.subr.mxu0 %v1212_v32  ;;  %v926_v50 = vld [vmem:[%s1523_s4] ss:$0 sm:$0xff]  ;;  %p1135_p13 = pnand %p1134_p12, %p1300_p4 }
  0x20   : > { %v653_v8 = vld [vmem:[#allocation2] sm:$0x1] }
  0x21   : > { %1005 = vmatmul.mubr.msk.bf16.vlgmr.msra.gmra.mxu0 %vm429_vm2, %v1124_v11  ;;  %p1136_p0 = pneg %p1135_p13 }
  0x22   : > { %1015 = vmatpush3.bf16.msra.mxu1 %v1128_v10  ;;  %1029 = vmatpush3.msra.mxu0 %v685_v33 }
  0x23   : > { %1016 = vmatprep.subr.bf16.mxu1 %v1129_v12  ;;  %1030 = vmatprep.subr.mxu0 %v1212_v32 }
  0x24   : > { %1031 = vmatpush3.msra.mxu0 %v684_v34  ;;  %1060 = vmatprep.mubr.msk.f32.mxu0 %vm1213_vm3, %v1212_v32 }
  0x25   : > { %1032 = vmatprep.subr.mxu0 %v1212_v32 }
  0x26   : > { %1017 = vmatpush3.bf16.msra.mxu1 %v1129_v12  ;;  %1033 = vmatpush3.msra.mxu0 %v683_v35 }
  0x27   : > { %1018 = vmatprep.subr.bf16.mxu1 %v1130_v13  ;;  %1034 = vmatprep.subr.mxu0 %v1212_v32 }
  0x28   : > { %1035 = vmatpush3.msra.mxu0 %v682_v36 }
  0x29   : > { %1036 = vmatprep.subr.mxu0 %v1212_v32 }
  0x2a   : > { %1019 = vmatpush3.bf16.msra.mxu1 %v1130_v13  ;;  %1037 = vmatpush3.msra.mxu0 %v681_v37  ;;  %v686_v13 = vld [vmem:[%s1525_s6] sm:$0x1] }
  0x2b   : > { %1020 = vmatprep.subr.bf16.mxu1 %v1131_v14  ;;  %1038 = vmatprep.subr.mxu0 %v1212_v32 }
  0x2c   : > { %1039 = vmatpush3.msra.mxu0 %v680_v38 }
  0x2d   : > { %1040 = vmatprep.subr.mxu0 %v1212_v32 }
  0x2e   : > { %1021 = vmatpush3.bf16.msra.mxu1 %v1131_v14  ;;  %1041 = vmatpush3.msra.mxu0 %v679_v39 }
  0x2f   : > { %1022 = vmatprep.subr.bf16.mxu1 %v1132_v15  ;;  %1042 = vmatprep.subr.mxu0 %v1212_v32 }
  0x30   : > { %1043 = vmatpush3.msra.mxu0 %v678_v40 }
  0x31   : > { %1044 = vmatprep.subr.mxu0 %v1212_v32 }
  0x32   : > { %1023 = vmatpush3.bf16.msra.mxu1 %v1132_v15  ;;  %1045 = vmatpush3.msra.mxu0 %v677_v41 }
  0x33   : > { %1046 = vmatprep.subr.mxu0 %v1212_v32 }
  0x34   : > { %1047 = vmatpush3.msra.mxu0 %v676_v42 }
  0x35   : > { %1048 = vmatprep.subr.mxu0 %v1212_v32 }
  0x36   : > { %1049 = vmatpush3.msra.mxu0 %v675_v43 }
  0x37   : > { %1050 = vmatprep.subr.mxu0 %v1212_v32 }
  0x38   : > { %1051 = vmatpush3.msra.mxu0 %v674_v44 }
  0x39   : > { %1052 = vmatprep.subr.mxu0 %v1212_v32 }
  0x3a   : > { %1053 = vmatpush3.msra.mxu0 %v673_v45 }
  0x3b   : > { %1054 = vmatprep.subr.mxu0 %v1212_v32 }
  0x3c   : > { %1055 = vmatpush3.msra.mxu0 %v672_v46 }
  0x3d   : > { %1056 = vmatprep.subr.mxu0 %v1212_v32 }
  0x3e   : > { %1057 = vmatpush3.msra.mxu0 %v671_v47 }
  0x3f   : > { %1058 = vmatprep.subr.mxu0 %v1212_v32 }
  0x40   : > { %1059 = vmatpush3.msra.mxu0 %v670_v48 }
  0xe1   : > { %v1357_v16 = vpop.f32.mrf.mxu0 }
  0xe2   : > { %v494_v29 = vmul.f32 %v1357_v16, %v955_v23  ;;  %vm640_vm6 = vcmp.ne.f32.partialorder %v1357_v16, 0.0 }
  0xe3   : > { %v1363_v19 = vpop.f32.mrf.mxu0 }
  0xe4   : > { %v492_v27 = vmul.f32 %v951_v21, %v1363_v19  ;;  %vm638_vm4 = vcmp.ne.f32.partialorder %v1363_v19, 0.0 }
  0xe5   : > { %v1369_v24 = vpop.f32.mrf.mxu0 }
  0xe6   : > { %v495_v25 = vmul.f32 %v1369_v24, %v956_v20  ;;  %vm641_vm7 = vcmp.ne.f32.partialorder %v1369_v24, 0.0 }
  0xe7   : > { %v1374_v26 = vpop.f32.mrf.mxu0 }
  0xe8   : > { %v493_v28 = vmul.f32 %v952_v22, %v1374_v26  ;;  %v497_v31 = vpack.c.bf16 %v495_v25, %v494_v29  ;;  %vm639_vm5 = vcmp.ne.f32.partialorder %v1374_v26, 0.0 }
  0xea   : > { %v496_v30 = vpack.c.bf16 %v493_v28, %v492_v27 }
  0xec   : > { %1024 = vmatprep.mubr.bf16.mxu1 %v496_v30 }
  0xed   : > { %1025 = vmatmul.mubr.bf16.vlgmr.msra.gmra.mxu1 %v497_v31 }
 0x1ad   : > { %v1026_v49 = vpop.f32.mrf.mxu1 }
 0x1ae   : > { %v612_v53 = vadd.f32 %v1026_v49, %v926_v50 }
 0x1af   : > { %v603_v51 = vpop.f32.mrf.mxu1 }
 0x1b0   : > { %v604_v54 = vadd.f32 %v926_v50, %v603_v51  ;;  %v644_v63 = vsel %vm640_vm6, %v955_v23, %v612_v53 }
 0x1b1   : > { %v1027_v52 = vpop.f32.mrf.mxu1 }
 0x1b2   : > { %v615_v55 = vadd.f32 %v1027_v52, %v926_v50  ;;  %v642_v59 = vsel %vm638_vm4, %v951_v21, %v604_v54 }
 0x1b3   : > { %v606_v56 = vpop.f32.mrf.mxu1 }
 0x1b4   : > { %v965_v57 = vpack.c.bf16 %v615_v55, %v612_v53  ;;  %v607_v58 = vadd.f32 %v926_v50, %v606_v56  ;;  %v645_v1 = vsel %vm641_vm7, %v956_v20, %v615_v55 }
 0x1b6   : > { %968 = vst [vmem:[%s389_s11 + $0x8] sm:$0xff] %v965_v57   ;;  %v960_v60 = vpack.c.bf16 %v607_v58, %v604_v54  ;;  %v643_v61 = vsel %vm639_vm5, %v952_v22, %v607_v58 }
 0x1b7   : > { %v654_v62 = vadd.f32 %v643_v61, %v642_v59 }
 0x1b8   : > { %961 = vst [vmem:[%s389_s11] sm:$0xff] %v960_v60   ;;  %s1214_s11 = smov [#allocation3]  }
 0x1b9   : > { %v655_v0 = vadd.f32 %v654_v62, %v644_v63  ;;  %s1137_s16 = sshll.u32 %s1214_s11, 4  ;;  %s1138_s16 = int_to_ptr.vmem [resolvable:$false] %s1137_s16 }
 0x1ba   : > { %s1139_s30 = scalar_lea.vmem %s1138_s16, 32  ;;  %p1140_p1 = scmp.lt.s32.totalorder %s786_s21, %s1138_s16 }
 0x1bb   : > { %v656_v2 = vadd.f32 %v655_v0, %v645_v1  ;;  %p1141_p2 = scmp.lt.s32.totalorder %s1139_s30, %s1133_s26 }
 0x1bd   : > { %v657_v3 = vrot.slane %v656_v2, 4  ;;  %p1142_p3 = por %p1141_p2, %p1140_p1 }
 0x1bf   : > { %v658_v4 = vadd.f32 %v657_v3, %v656_v2  ;;  %p1143_p5 = pnand %p1142_p3, %p1136_p0 }
 0x1c1   : > { %v659_v5 = vrot.slane %v658_v4, 2 }
 0x1c3   : > { %v660_v6 = vadd.f32 %v659_v5, %v658_v4 }
 0x1c5   : > { %v661_v7 = vrot.slane %v660_v6, 1 }
 0x1c7   : > { %v662_v9 = vadd.f32 %v661_v7, %v660_v6 }
 0x1c9   : > { %v663_v10 = vadd.f32 %v662_v9, %v653_v8 }
 0x1cb   : > { %664 = vst [vmem:[#allocation2] sm:$0x1] %v663_v10 }
 0x1d2   : > { %v668_v11 = vld [vmem:[#allocation2] sm:$0x1] }
 0x1d3   : > { %v669_v12 = vmul.f32 0.03125, %v668_v11 }
 0x1d5   : > { %1061 = vmatmul.mubr.f32.vlgmr.msra.gmra.mxu0 %v669_v12 }
 0x295   : > { %v753_v14 = vpop.f32.mrf.mxu0 }
 0x296   : > { %v754_v15 = vadd.f32 %v753_v14, %v686_v13 }
 0x297   : > { %v1062_v16 = vpop.f32.mrf.mxu0 }
 0x298   : > { %758 = vst.msk [vmem:[%s360_s14] sm:$0x1] %vm651_vm8, %v754_v15 }
 0x299   : > { %1146 = shalt.err (!%p1143_p5)
}
 0x29a   : > { %s1147_s14 = scalar_lea.hbm %s1479_s24, 16  ;;  %s1151_s20 = scalar_lea.hbm %s1527_s8, 32 }
 0x29b   : > { %p1148_p6 = scmp.ne.s32.totalorder %s1479_s24, %s1147_s14  ;;  %p1152_p10 = scmp.lt.s32.totalorder %s1479_s24, %s1527_s8 }
 0x29c   : > { %p1153_p11 = scmp.lt.s32.totalorder %s1151_s20, %s1147_s14 }
 0x29d   : > { %p1149_p7 = pnand %p1148_p6, %p1300_p4 }
 0x29e   : > { %p1154_p12 = por %p1153_p11, %p1152_p10 }
 0x29f   : > { %p1150_p9 = pneg %p1149_p7 }
 0x2a1   : > { %p1155_p13 = pnand %p1154_p12, %p1150_p9 }
 0x2a3   : > { %1158 = shalt.err (!%p1155_p13)
}
 0x2a4   : > { %1063 = dma.vmem_to_hbm [thread:$0]  (%p1300_p4), %s786_s21, 16, %s1479_s24, %s769_s25  }
 0x2a5 PF: > { %p1069_p0 = scmp.ge.s32.totalorder %s1209_s10, 2  ;;  %s809_s26 = sand.u32 1, %s1189_s27  }
 0x2a6   : > { %s810_s11 = scalar_lea.sflag [#allocation4], %s809_s26 }
 0x2a7   : > { %p1066_p1 = pnand %p1069_p0, %p1307_p8 }
 0x2a9   : > { %p1067_p2 = pneg %p1066_p1 }
 0x2ab   : > { %1184 = dma.done.wait (%p1067_p2), %s810_s11, 16  }
 0x2ac   : > { %1186 = vsyncadd (%p1067_p2), %s810_s11, 4294967280  ;;  %s22_s10 = sadd.s32 1, %s1209_s10   ;;  %s1530_s27 = smov %s1193_s28 }
 0x2ad   : > { %p19_p3 = scmp.ge.s32.totalorder %s22_s10, 4   ;;  %s1531_s28 = smov %s1197_s29 }
 0x2ae   : > { %s1532_s29 = smov %s1313_s18  ;;  %s1533_s30 = smov %s1205_s9 }
 0x2af   : > { %s1534_s9 = smov %s1536_s13  ;;  %21 = sbr.rel (!%p19_p3) target bundleno = 4 (0x4), region = 106 }
 0x2b4   :  { %814 = vsyncpa [#allocation4], 1 }
 0x2b5   :  { %816 = vsyncpa [#allocation4 + $0x1], 1 }

</bundles_post_ra>
